<compile_context>
chip_gen: v7x
topology: tpu7x:2x2x1
jax: 0.10.0
libtpu: 0.0.40
codegen_flags: <defaults>
</compile_context>

<pallas_src>
import math

import jax
import jax.numpy as jnp
from jax.experimental import pallas as pl
from jax.experimental.pallas import tpu as pltpu


LANE = 128


def _round_up(n, m):
    return ((n + m - 1) // m) * m


def _actor_kernel(x_ref, w1_ref, b1_ref, w2_ref, b2_ref, w3_ref, b3_ref, o_ref):
    # bf16 MXU operands, f32 accumulation.  Bias + ReLU in f32, then the
    # result is immediately narrowed to bf16 (next MXU operand) so the f32
    # intermediate does not stay live alongside the bf16 copy.
    x = x_ref[...]                                                      # (TB, S_p) bf16
    h1 = jnp.dot(x, w1_ref[...], preferred_element_type=jnp.float32)
    h1 = jnp.maximum(h1 + b1_ref[...], 0.0).astype(jnp.bfloat16)        # ReLU -> bf16
    h2 = jnp.dot(h1, w2_ref[...], preferred_element_type=jnp.float32)
    h2 = jnp.maximum(h2 + b2_ref[...], 0.0).astype(jnp.bfloat16)        # ReLU -> bf16
    out = jnp.dot(h2, w3_ref[...], preferred_element_type=jnp.float32)
    o_ref[...] = jnp.tanh(out + b3_ref[...]).astype(o_ref.dtype)        # bf16 store


def init_ua_actor_params(key, nb_states, nb_actions, hidden1=400, hidden2=300,
                         init_w=0.003):
    """Deterministic init mirroring UAActor.init_weights (logical shapes, f32):
       - fc1/fc2 weights: fanin_init -> U(-1/sqrt(fan_in), 1/sqrt(fan_in))
       - fc3 weights: U(-init_w, init_w)
       - biases keep nn.Linear default: U(-1/sqrt(fan_in), 1/sqrt(fan_in))
    Weights are produced directly in [in, out] layout (transpose of nn.Linear)."""
    ks = jax.random.split(key, 6)

    def u(k, shape, bound):
        return jax.random.uniform(k, shape, jnp.float32, minval=-bound, maxval=bound)

    v1 = 1.0 / math.sqrt(nb_states)
    v2 = 1.0 / math.sqrt(hidden1)
    v3 = 1.0 / math.sqrt(hidden2)
    return {
        "w1": u(ks[0], (nb_states, hidden1), v1),
        "b1": u(ks[1], (1, hidden1), v1),
        "w2": u(ks[2], (hidden1, hidden2), v2),
        "b2": u(ks[3], (1, hidden2), v2),
        "w3": u(ks[4], (hidden2, nb_actions), init_w),
        "b3": u(ks[5], (1, nb_actions), v3),
    }


def prepare_ua_actor_params(params):
    """Zero-pad every dim to a multiple of 128 and cast weights to bf16.
    Biases stay f32 (added after the f32 accumulation).  Done once, reused."""
    w1, b1 = params["w1"], params["b1"]
    w2, b2 = params["w2"], params["b2"]
    w3, b3 = params["w3"], params["b3"]
    S, H1 = w1.shape
    H2 = w2.shape[1]
    A = w3.shape[1]
    S_p, H1_p, H2_p, A_p = (_round_up(d, LANE) for d in (S, H1, H2, A))

    def pad2(a, r, c):
        return jnp.pad(a, ((0, r - a.shape[0]), (0, c - a.shape[1])))

    return {
        "w1": pad2(w1, S_p, H1_p).astype(jnp.bfloat16),
        "b1": pad2(b1, 1, H1_p),
        "w2": pad2(w2, H1_p, H2_p).astype(jnp.bfloat16),
        "b2": pad2(b2, 1, H2_p),
        "w3": pad2(w3, H2_p, A_p).astype(jnp.bfloat16),
        "b3": pad2(b3, 1, A_p),
        "nb_states": S,
        "nb_actions": A,
    }


def _default_block_b(B):
    """Batch tile choice:
       * always a multiple of 16 (bf16 packs 2 rows per sublane -> dense vregs)
       * B <= 512: one grid step over the whole padded batch (kills per-step overhead)
       * larger B: ~1024-row tiles with >= 2 grid steps (v7x dual-TC sharding of the
         'parallel' batch axis), TB capped around 1024 to stay inside v7x scoped VMEM."""
    B16 = _round_up(B, 16)
    if B16 <= 512:
        return B16
    n_tiles = max(2, pl.cdiv(B16, 1024))
    return _round_up(pl.cdiv(B16, n_tiles), 16)


def ua_actor_forward(x, pp, block_b=None):
    """x: [B, nb_states] f32; pp: output of prepare_ua_actor_params."""
    B, S = x.shape
    S_p, H1_p = pp["w1"].shape
    H2_p = pp["w2"].shape[1]
    A_p = pp["w3"].shape[1]
    nb_actions = pp["nb_actions"]

    TB = _default_block_b(B) if block_b is None else _round_up(block_b, 16)
    B_p = _round_up(B, TB)

    # Single fused pad (batch + feature axes) of the bf16 input -> one XLA pad op.
    x_p = jnp.pad(x.astype(jnp.bfloat16), ((0, B_p - B), (0, S_p - S)))

    grid = (B_p // TB,)

    def weight_spec(shape):
        # Constant index_map -> block never changes; single-buffer it to save VMEM.
        return pl.BlockSpec(shape, lambda i: (0, 0), pipeline_mode=pl.Buffered(1))

    flops = 2 * B_p * (S_p * H1_p + H1_p * H2_p + H2_p * A_p)
    bytes_accessed = (
        B_p * S_p * 2                                                     # x (bf16)
        + (pp["w1"].size + pp["w2"].size + pp["w3"].size) * 2             # weights (bf16)
        + (pp["b1"].size + pp["b2"].size + pp["b3"].size) * 4             # biases (f32)
        + B_p * A_p * 2)                                                  # out (bf16)
    cost = pl.CostEstimate(flops=flops, transcendentals=B_p * A_p,
                           bytes_accessed=bytes_accessed)

    out_padded = pl.pallas_call(
        _actor_kernel,
        out_shape=jax.ShapeDtypeStruct((B_p, A_p), jnp.bfloat16),        # bf16 writeback
        grid=grid,
        in_specs=[
            pl.BlockSpec((TB, S_p), lambda i: (i, 0)),                   # x tile (pipelined)
            weight_spec((S_p, H1_p)),                                    # weights: VMEM-resident
            weight_spec((1, H1_p)),
            weight_spec((H1_p, H2_p)),
            weight_spec((1, H2_p)),
            weight_spec((H2_p, A_p)),
            weight_spec((1, A_p)),
        ],
        out_specs=pl.BlockSpec((TB, A_p), lambda i: (i, 0)),             # lane-dense output
        compiler_params=pltpu.CompilerParams(
            dimension_semantics=("parallel",)),                          # v7x: shard batch across TCs
        cost_estimate=cost,
    )(x_p, pp["w1"], pp["b1"], pp["w2"], pp["b2"], pp["w3"], pp["b3"])

    return out_padded[:B, :nb_actions].astype(jnp.float32)


def ua_actor_forward_ref_f32(x, p):
    """Full-precision reference (logical shapes)."""
    h1 = jnp.maximum(x @ p["w1"] + p["b1"], 0.0)
    h2 = jnp.maximum(h1 @ p["w2"] + p["b2"], 0.0)
    return jnp.tanh(h2 @ p["w3"] + p["b3"])


def ua_actor_forward_ref_bf16(x, p):
    """Reference mimicking the kernel numerics: bf16 matmul operands,
    f32 accumulation + bias + ReLU, bf16 re-cast, bf16 output."""
    bf = jnp.bfloat16
    h1 = jnp.dot(x.astype(bf), p["w1"].astype(bf),
                 preferred_element_type=jnp.float32) + p["b1"]
    h1 = jnp.maximum(h1, 0.0).astype(bf)
    h2 = jnp.dot(h1, p["w2"].astype(bf),
                 preferred_element_type=jnp.float32) + p["b2"]
    h2 = jnp.maximum(h2, 0.0).astype(bf)
    o = jnp.dot(h2, p["w3"].astype(bf),
                preferred_element_type=jnp.float32) + p["b3"]
    return jnp.tanh(o).astype(bf).astype(jnp.float32)


if __name__ == "__main__":
    key = jax.random.PRNGKey(0)
    k_param, k_x = jax.random.split(key)

    nb_states, nb_actions = 32, 8
    hidden1, hidden2 = 400, 300

    params = init_ua_actor_params(k_param, nb_states, nb_actions, hidden1, hidden2)
    padded = prepare_ua_actor_params(params)

    # Test 1: small RL-style batch -> single grid step (TB = 16, grid=(1,)).
    B = 16
    x = jax.random.normal(k_x, (B, nb_states), jnp.float32)
    out = jax.block_until_ready(ua_actor_forward(x, padded))
    assert out.shape == (B, nb_actions)

    ref_bf16 = jax.block_until_ready(ua_actor_forward_ref_bf16(x, params))
    ref_f32 = jax.block_until_ready(ua_actor_forward_ref_f32(x, params))
    assert jnp.allclose(out, ref_bf16, atol=2e-3, rtol=2e-3), "mismatch vs bf16 reference"
    assert jnp.allclose(out, ref_f32, atol=3e-2, rtol=3e-2), "mismatch vs f32 reference"

    # Test 2: batch not divisible by the tile -> multi-step grid + batch padding.
    B2 = 40
    x2 = jax.random.normal(jax.random.PRNGKey(1), (B2, nb_states), jnp.float32)
    out2 = jax.block_until_ready(ua_actor_forward(x2, padded, block_b=16))
    assert out2.shape == (B2, nb_actions)
    assert jnp.allclose(out2, ua_actor_forward_ref_f32(x2, params),
                        atol=3e-2, rtol=3e-2), "multi-tile mismatch vs f32 reference"

    print("KERNEL_OK")
</pallas_src>

<mosaic_0001>
module attributes {stable_mosaic.version = 11 : i64} {
  func.func @_actor_kernel(%arg0: i32, %arg1: memref<16x128xbf16, #tpu.memory_space<vmem>>, %arg2: memref<128x512xbf16, #tpu.memory_space<vmem>>, %arg3: memref<1x512xf32, #tpu.memory_space<vmem>>, %arg4: memref<512x384xbf16, #tpu.memory_space<vmem>>, %arg5: memref<1x384xf32, #tpu.memory_space<vmem>>, %arg6: memref<384x128xbf16, #tpu.memory_space<vmem>>, %arg7: memref<1x128xf32, #tpu.memory_space<vmem>>, %arg8: memref<16x128xbf16, #tpu.memory_space<vmem>>) attributes {dimension_semantics = [#tpu.dimension_semantics<parallel>], iteration_bounds = array<i64: 1>, scalar_prefetch = 0 : i64, scratch_operands = 0 : i64, tpu.core_type = #tpu.core_type<tc>, window_params = [{transform_indices = @transform_0, window_bounds = array<i64: 16, 128>}, {pipeline_mode = #tpu.pipeline_mode<synchronous>, transform_indices = @transform_1, window_bounds = array<i64: 128, 512>}, {pipeline_mode = #tpu.pipeline_mode<synchronous>, transform_indices = @transform_2, window_bounds = array<i64: 1, 512>}, {pipeline_mode = #tpu.pipeline_mode<synchronous>, transform_indices = @transform_3, window_bounds = array<i64: 512, 384>}, {pipeline_mode = #tpu.pipeline_mode<synchronous>, transform_indices = @transform_4, window_bounds = array<i64: 1, 384>}, {pipeline_mode = #tpu.pipeline_mode<synchronous>, transform_indices = @transform_5, window_bounds = array<i64: 384, 128>}, {pipeline_mode = #tpu.pipeline_mode<synchronous>, transform_indices = @transform_6, window_bounds = array<i64: 1, 128>}, {transform_indices = @transform_7, window_bounds = array<i64: 16, 128>}]} {
    %c0 = arith.constant 0 : index
    %c0_0 = arith.constant 0 : index
    %0 = vector.load %arg1[%c0, %c0_0] : memref<16x128xbf16, #tpu.memory_space<vmem>>, vector<16x128xbf16>
    %c0_1 = arith.constant 0 : index
    %c0_2 = arith.constant 0 : index
    %1 = vector.load %arg2[%c0_1, %c0_2] : memref<128x512xbf16, #tpu.memory_space<vmem>>, vector<128x512xbf16>
    %cst = arith.constant dense<0.000000e+00> : vector<16x512xf32>
    %2 = tpu.matmul %0, %1, %cst {dimension_numbers = #tpu.dot_dimension_numbers<[1], [0], [0], [1], [0, 0, 1, 1], [], []>} : vector<16x128xbf16>, vector<128x512xbf16>, vector<16x512xf32> -> vector<16x512xf32>
    %c0_3 = arith.constant 0 : index
    %c0_4 = arith.constant 0 : index
    %3 = vector.load %arg3[%c0_3, %c0_4] : memref<1x512xf32, #tpu.memory_space<vmem>>, vector<1x512xf32>
    %4 = vector.broadcast %3 : vector<1x512xf32> to vector<16x512xf32>
    %5 = arith.addf %2, %4 : vector<16x512xf32>
    %cst_5 = arith.constant 0.000000e+00 : f32
    %6 = vector.broadcast %cst_5 : f32 to vector<16x512xf32>
    %7 = arith.maximumf %5, %6 : vector<16x512xf32>
    %8 = arith.truncf %7 : vector<16x512xf32> to vector<16x512xbf16>
    %c0_6 = arith.constant 0 : index
    %c0_7 = arith.constant 0 : index
    %9 = vector.load %arg4[%c0_6, %c0_7] : memref<512x384xbf16, #tpu.memory_space<vmem>>, vector<512x384xbf16>
    %cst_8 = arith.constant dense<0.000000e+00> : vector<16x384xf32>
    %10 = tpu.matmul %8, %9, %cst_8 {dimension_numbers = #tpu.dot_dimension_numbers<[1], [0], [0], [1], [0, 0, 1, 1], [], []>} : vector<16x512xbf16>, vector<512x384xbf16>, vector<16x384xf32> -> vector<16x384xf32>
    %c0_9 = arith.constant 0 : index
    %c0_10 = arith.constant 0 : index
    %11 = vector.load %arg5[%c0_9, %c0_10] : memref<1x384xf32, #tpu.memory_space<vmem>>, vector<1x384xf32>
    %12 = vector.broadcast %11 : vector<1x384xf32> to vector<16x384xf32>
    %13 = arith.addf %10, %12 : vector<16x384xf32>
    %cst_11 = arith.constant 0.000000e+00 : f32
    %14 = vector.broadcast %cst_11 : f32 to vector<16x384xf32>
    %15 = arith.maximumf %13, %14 : vector<16x384xf32>
    %16 = arith.truncf %15 : vector<16x384xf32> to vector<16x384xbf16>
    %c0_12 = arith.constant 0 : index
    %c0_13 = arith.constant 0 : index
    %17 = vector.load %arg6[%c0_12, %c0_13] : memref<384x128xbf16, #tpu.memory_space<vmem>>, vector<384x128xbf16>
    %cst_14 = arith.constant dense<0.000000e+00> : vector<16x128xf32>
    %18 = tpu.matmul %16, %17, %cst_14 {dimension_numbers = #tpu.dot_dimension_numbers<[1], [0], [0], [1], [0, 0, 1, 1], [], []>} : vector<16x384xbf16>, vector<384x128xbf16>, vector<16x128xf32> -> vector<16x128xf32>
    %c0_15 = arith.constant 0 : index
    %c0_16 = arith.constant 0 : index
    %19 = vector.load %arg7[%c0_15, %c0_16] : memref<1x128xf32, #tpu.memory_space<vmem>>, vector<1x128xf32>
    %20 = vector.broadcast %19 : vector<1x128xf32> to vector<16x128xf32>
    %21 = arith.addf %18, %20 : vector<16x128xf32>
    %22 = math.tanh %21 : vector<16x128xf32>
    %23 = arith.truncf %22 : vector<16x128xf32> to vector<16x128xbf16>
    %c0_17 = arith.constant 0 : index
    %c0_18 = arith.constant 0 : index
    %24 = vector.load %arg8[%c0_17, %c0_18] : memref<16x128xbf16, #tpu.memory_space<vmem>>, vector<16x128xbf16>
    tpu.vector_store %arg8[%c0_17, %c0_18], %23 {strides = array<i32>} : memref<16x128xbf16, #tpu.memory_space<vmem>>, vector<16x128xbf16>,
    return
  }
  func.func @transform_0(%arg0: i32) -> (i32, i32) {
    %c0_i32 = arith.constant 0 : i32
    %c0_i32_0 = arith.constant 0 : i32
    return %arg0, %c0_i32 : i32, i32
  }
  func.func @transform_1(%arg0: i32) -> (i32, i32) {
    %c0_i32 = arith.constant 0 : i32
    %c0_i32_0 = arith.constant 0 : i32
    %c0_i32_1 = arith.constant 0 : i32
    return %c0_i32, %c0_i32_0 : i32, i32
  }
  func.func @transform_2(%arg0: i32) -> (i32, i32) {
    %c0_i32 = arith.constant 0 : i32
    %c0_i32_0 = arith.constant 0 : i32
    %c0_i32_1 = arith.constant 0 : i32
    return %c0_i32, %c0_i32_0 : i32, i32
  }
  func.func @transform_3(%arg0: i32) -> (i32, i32) {
    %c0_i32 = arith.constant 0 : i32
    %c0_i32_0 = arith.constant 0 : i32
    %c0_i32_1 = arith.constant 0 : i32
    return %c0_i32, %c0_i32_0 : i32, i32
  }
  func.func @transform_4(%arg0: i32) -> (i32, i32) {
    %c0_i32 = arith.constant 0 : i32
    %c0_i32_0 = arith.constant 0 : i32
    %c0_i32_1 = arith.constant 0 : i32
    return %c0_i32, %c0_i32_0 : i32, i32
  }
  func.func @transform_5(%arg0: i32) -> (i32, i32) {
    %c0_i32 = arith.constant 0 : i32
    %c0_i32_0 = arith.constant 0 : i32
    %c0_i32_1 = arith.constant 0 : i32
    return %c0_i32, %c0_i32_0 : i32, i32
  }
  func.func @transform_6(%arg0: i32) -> (i32, i32) {
    %c0_i32 = arith.constant 0 : i32
    %c0_i32_0 = arith.constant 0 : i32
    %c0_i32_1 = arith.constant 0 : i32
    return %c0_i32, %c0_i32_0 : i32, i32
  }
  func.func @transform_7(%arg0: i32) -> (i32, i32) {
    %c0_i32 = arith.constant 0 : i32
    %c0_i32_0 = arith.constant 0 : i32
    return %arg0, %c0_i32 : i32, i32
  }
}

</mosaic_0001>

<bundles_post_ra>
// kernel: tpu_custom_call.1
= control target key start
LH: loop header
LB: loop body
LE: loop exit
PB: predicated region body
PF: predicated region fallthrough
CT: control target
= control target key end

     0   :  { %12 = vsyncpa [#allocation3], 0  ;;  %s2315_s0 = inlined_call_operand.hbm [shape: bf16[16,128], index: 0, kind: input, shape index: {}]   ;;  %s2316_s1 = inlined_call_operand.hbm [shape: bf16[128,512], index: 1, kind: input, shape index: {}]   ;;  %s2317_s2 = inlined_call_operand.vmem [shape: f32[1,512], index: 2, kind: input, shape index: {}]   ;;  %s2318_s3 = inlined_call_operand.hbm [shape: bf16[512,384], index: 3, kind: input, shape index: {}]   ;;  %s2319_s4 = inlined_call_operand.vmem [shape: f32[1,384], index: 4, kind: input, shape index: {}]   ;;  %s2320_s5 = inlined_call_operand.hbm [shape: bf16[384,128], index: 5, kind: input, shape index: {}]   ;;  %s2321_s6 = inlined_call_operand.vmem [shape: f32[1,128], index: 6, kind: input, shape index: {}]   ;;  %s2322_s7 = inlined_call_operand.hbm [shape: bf16[16,128], index: 7, kind: output, shape index: {}]  }
   0x1   :  { %13 = vsyncpa [#allocation6], 0 }
   0x2   :  { %14 = vsyncpa [#allocation9], 0 }
   0x3   :  { %15 = vsyncpa [#allocation4], 0  ;;  %s2152_s24 = smov [#allocation5]   ;;  %s2034_s28 = scalar_lea.hbm %s2316_s1, 4096 }
   0x4   :  { %s33_s25 = sshll.u32 %s2152_s24, 4  ;;  %p2035_p0 = scmp.ne.s32.totalorder %s2316_s1, %s2034_s28  ;;  %s34_s25 = int_to_ptr.vmem [resolvable:$true] %s33_s25 }
   0x5   :  { %p2038_p1 = scmp.lt.u32.totalorder %s2034_s28, %s2316_s1 }
   0x7   :  { %p2040_p2 = pnand %p2038_p1, %p2035_p0 }
   0x9   :  { %2043 = shalt.err (!%p2040_p2)
}
   0xa   :  { %s2044_s10 = scalar_lea.vmem %s34_s25, 4096  ;;  %p2049_p4 = scmp.lt.s32.totalorder %s34_s25, %s34_s25 }
   0xb   :  { %p2045_p3 = scmp.ne.s32.totalorder %s34_s25, %s2044_s10  ;;  %p2050_p5 = scmp.lt.s32.totalorder %s2044_s10, %s2044_s10 }
   0xd   :  { %p2051_p6 = por %p2050_p5, %p2049_p4 }
   0xf   :  { %p2052_p7 = pnand %p2051_p6, %p2045_p3 }
  0x11   :  { %2055 = shalt.err (!%p2052_p7)
}
  0x12   :  { %s2153_s11 = smov 256   ;;  %s2154_s12 = smov 16  }
  0x13   :  { %39 = dma.hbm_to_vmem [thread:$0]  %s2316_s1, 4096, %s34_s25, [#allocation6], %s2153_s11, %s2153_s11, %s2154_s12  }
  0x14   :  { %s2155_s15 = smov [#allocation2]   ;;  %s2056_s19 = scalar_lea.hbm %s2315_s0, 128 }
  0x15   :  { %s21_s16 = sshll.u32 %s2155_s15, 4  ;;  %p2057_p8 = scmp.ne.s32.totalorder %s2315_s0, %s2056_s19  ;;  %s22_s16 = int_to_ptr.vmem [resolvable:$true] %s21_s16 }
  0x16   :  { %p2060_p9 = scmp.lt.u32.totalorder %s2056_s19, %s2315_s0 }
  0x18   :  { %p2062_p10 = pnand %p2060_p9, %p2057_p8 }
  0x1a   :  { %2065 = shalt.err (!%p2062_p10)
}
  0x1b   :  { %s2066_s24 = scalar_lea.vmem %s22_s16, 128  ;;  %p2071_p12 = scmp.lt.s32.totalorder %s22_s16, %s22_s16 }
  0x1c   :  { %p2067_p11 = scmp.ne.s32.totalorder %s22_s16, %s2066_s24  ;;  %p2072_p13 = scmp.lt.s32.totalorder %s2066_s24, %s2066_s24 }
  0x1e   :  { %p2073_p0 = por %p2072_p13, %p2071_p12 }
  0x20   :  { %p2074_p1 = pnand %p2073_p0, %p2067_p11 }
  0x22   :  { %2077 = shalt.err (!%p2074_p1)
}
  0x23   :  { %s2156_s1 = smov 64   ;;  %s2157_s25 = smov 4  }
  0x24   :  { %27 = dma.hbm_to_vmem [thread:$0]  %s2315_s0, 128, %s22_s16, [#allocation3], %s2156_s1, %s2156_s1, %s2157_s25  }
  0x25   :  { %s2158_s28 = smov [#allocation7]   ;;  %s2078_s9 = scalar_lea.hbm %s2318_s3, 12288 }
  0x26   :  { %s47_s29 = sshll.u32 %s2158_s28, 4  ;;  %p2079_p2 = scmp.ne.s32.totalorder %s2318_s3, %s2078_s9  ;;  %s48_s29 = int_to_ptr.vmem [resolvable:$true] %s47_s29 }
  0x27   :  { %p2082_p3 = scmp.lt.u32.totalorder %s2078_s9, %s2318_s3 }
  0x29   :  { %p2084_p4 = pnand %p2082_p3, %p2079_p2 }
  0x2b   :  { %2087 = shalt.err (!%p2084_p4)
}
  0x2c   :  { %s2088_s14 = scalar_lea.vmem %s48_s29, 12288  ;;  %p2093_p6 = scmp.lt.s32.totalorder %s48_s29, %s48_s29 }
  0x2d   :  { %p2089_p5 = scmp.ne.s32.totalorder %s48_s29, %s2088_s14  ;;  %p2094_p7 = scmp.lt.s32.totalorder %s2088_s14, %s2088_s14 }
  0x2f   :  { %p2095_p8 = por %p2094_p7, %p2093_p6 }
  0x31   :  { %p2096_p9 = pnand %p2095_p8, %p2089_p5 }
  0x33   :  { %2099 = shalt.err (!%p2096_p9)
}
  0x34   :  { %s2159_s0 = smov 192   ;;  %s2160_s15 = smov 12  }
  0x35   :  { %53 = dma.hbm_to_vmem [thread:$0]  %s2318_s3, 12288, %s48_s29, [#allocation6], %s2159_s0, %s2159_s0, %s2160_s15  }
  0x36   :  { %s2161_s18 = smov [#allocation8]   ;;  %s2100_s22 = scalar_lea.hbm %s2320_s5, 3072 }
  0x37   :  { %s61_s19 = sshll.u32 %s2161_s18, 4  ;;  %p2101_p10 = scmp.ne.s32.totalorder %s2320_s5, %s2100_s22  ;;  %s62_s19 = int_to_ptr.vmem [resolvable:$true] %s61_s19 }
  0x38   :  { %p2104_p11 = scmp.lt.u32.totalorder %s2100_s22, %s2320_s5 }
  0x3a   :  { %p2106_p12 = pnand %p2104_p11, %p2101_p10 }
  0x3c   :  { %2109 = shalt.err (!%p2106_p12)
}
  0x3d   :  { %s2110_s28 = scalar_lea.vmem %s62_s19, 3072  ;;  %p2115_p0 = scmp.lt.s32.totalorder %s62_s19, %s62_s19 }
  0x3e   :  { %p2111_p13 = scmp.ne.s32.totalorder %s62_s19, %s2110_s28  ;;  %p2116_p1 = scmp.lt.s32.totalorder %s2110_s28, %s2110_s28 }
  0x40   :  { %p2117_p2 = por %p2116_p1, %p2115_p0 }
  0x42   :  { %p2118_p3 = pnand %p2117_p2, %p2111_p13 }
  0x44   :  { %2121 = shalt.err (!%p2118_p3)
}
  0x45   :  { %67 = dma.hbm_to_vmem [thread:$0]  %s2320_s5, 3072, %s62_s19, [#allocation9], %s2156_s1, %s2156_s1, %s2157_s25  }
  0x46   :  { %2144 = dma.done.wait [#allocation3], 128  }
  0x47   :  { %2145 = vsyncadd [#allocation3], 4294967168 }
  0x48   :  { %2146 = dma.done.wait [#allocation6], 16384  }
  0x49   :  { %2147 = vsyncadd [#allocation6], 4294950912 }
  0x4a   :  { %2148 = dma.done.wait [#allocation9], 3072  }
  0x4b   :  { %2149 = vsyncadd [#allocation9], 4294964224  ;;  %v2162_v0 = vmov 0   ;;  %v1829_v1 = vld [vmem:[#allocation5 + $0x4] ss:$16 sps:$4 sm:$0xff]   ;;  %v1855_v29 = vld [vmem:[#allocation2] sm:$0xff]  }
  0x4c   :  { %337 = vmatprep.mubr.bf16.mxu0 %v2162_v0  ;;  %380 = vmatprep.mubr.bf16.mxu1 %v2162_v0  ;;  %v1831_v2 = vld [vmem:[#allocation5] ss:$16 sps:$4 sm:$0xff]   ;;  %v1832_v3 = vld [vmem:[#allocation5 + $0x24] ss:$16 sps:$4 sm:$0xff]   ;;  %v1853_v9 = vld [vmem:[#allocation5 + $0xc] ss:$16 sps:$4 sm:$0xff]  }
  0x4d   :  { %305 = vmatprep.subr.bf16.mxu0 %v1829_v1  ;;  %v1834_v4 = vld [vmem:[#allocation5 + $0x20] ss:$16 sps:$4 sm:$0xff]   ;;  %v1835_v5 = vld [vmem:[#allocation5 + $0x44] ss:$16 sps:$4 sm:$0xff]   ;;  %v1856_v11 = vld [vmem:[#allocation5 + $0x8] ss:$16 sps:$4 sm:$0xff]   ;;  %348 = vmatprep.subr.bf16.mxu1 %v1853_v9 }
  0x4e   :  { %306 = vmatpush1.bf16.msra.mxu0 %v1831_v2  ;;  %v1837_v6 = vld [vmem:[#allocation5 + $0x40] ss:$16 sps:$4 sm:$0xff]   ;;  %v1838_v7 = vld [vmem:[#allocation5 + $0x64] ss:$16 sps:$4 sm:$0xff]   ;;  %v1857_v12 = vld [vmem:[#allocation5 + $0x2c] ss:$16 sps:$4 sm:$0xff]   ;;  %349 = vmatpush1.bf16.msra.mxu1 %v1856_v11 }
  0x4f   :  { %307 = vmatprep.subr.bf16.mxu0 %v1832_v3  ;;  %v1840_v8 = vld [vmem:[#allocation5 + $0x60] ss:$16 sps:$4 sm:$0xff]   ;;  %v1841_v10 = vld [vmem:[#allocation5 + $0x84] ss:$16 sps:$4 sm:$0xff]   ;;  %v1859_v13 = vld [vmem:[#allocation5 + $0x28] ss:$16 sps:$4 sm:$0xff]   ;;  %350 = vmatprep.subr.bf16.mxu1 %v1857_v12 }
  0x50   :  { %v1843_v14 = vld [vmem:[#allocation5 + $0x80] ss:$16 sps:$4 sm:$0xff]   ;;  %v1860_v15 = vld [vmem:[#allocation5 + $0x4c] ss:$16 sps:$4 sm:$0xff]   ;;  %v1844_v16 = vld [vmem:[#allocation5 + $0xa4] ss:$16 sps:$4 sm:$0xff]  }
  0x51   :  { %v1862_v17 = vld [vmem:[#allocation5 + $0x48] ss:$16 sps:$4 sm:$0xff]   ;;  %v1846_v18 = vld [vmem:[#allocation5 + $0xa0] ss:$16 sps:$4 sm:$0xff]   ;;  %v1863_v19 = vld [vmem:[#allocation5 + $0x6c] ss:$16 sps:$4 sm:$0xff]  }
  0x52   :  { %308 = vmatpush1.bf16.msra.mxu0 %v1834_v4  ;;  %351 = vmatpush1.bf16.msra.mxu1 %v1859_v13  ;;  %v1847_v20 = vld [vmem:[#allocation5 + $0xc4] ss:$16 sps:$4 sm:$0xff]   ;;  %v1865_v21 = vld [vmem:[#allocation5 + $0x68] ss:$16 sps:$4 sm:$0xff]   ;;  %v1849_v22 = vld [vmem:[#allocation5 + $0xc0] ss:$16 sps:$4 sm:$0xff]  }
  0x53   :  { %309 = vmatprep.subr.bf16.mxu0 %v1835_v5  ;;  %352 = vmatprep.subr.bf16.mxu1 %v1860_v15  ;;  %v1866_v23 = vld [vmem:[#allocation5 + $0x8c] ss:$16 sps:$4 sm:$0xff]   ;;  %v1850_v24 = vld [vmem:[#allocation5 + $0xe4] ss:$16 sps:$4 sm:$0xff]   ;;  %v1868_v25 = vld [vmem:[#allocation5 + $0x88] ss:$16 sps:$4 sm:$0xff]  }
  0x54   :  { %v1852_v26 = vld [vmem:[#allocation5 + $0xe0] ss:$16 sps:$4 sm:$0xff]   ;;  %v1869_v27 = vld [vmem:[#allocation5 + $0xac] ss:$16 sps:$4 sm:$0xff]   ;;  %v1871_v30 = vld [vmem:[#allocation5 + $0xa8] ss:$16 sps:$4 sm:$0xff]  }
  0x55   :  { %v1880_v28 = vld [vmem:[#allocation7 + $0x4] ss:$12 sps:$4 sm:$0xff]   ;;  %v1872_v31 = vld [vmem:[#allocation5 + $0xcc] ss:$16 sps:$4 sm:$0xff]   ;;  %v1874_v34 = vld [vmem:[#allocation5 + $0xc8] ss:$16 sps:$4 sm:$0xff]  }
  0x56   :  { %310 = vmatpush1.bf16.msra.mxu0 %v1837_v6  ;;  %353 = vmatpush1.bf16.msra.mxu1 %v1862_v17  ;;  %v1878_v32 = vld [vmem:[#allocation7] ss:$12 sps:$4 sm:$0xff]   ;;  %v1883_v33 = vld [vmem:[#allocation7 + $0x1c] ss:$12 sps:$4 sm:$0xff]   ;;  %v1881_v36 = vld [vmem:[#allocation7 + $0x18] ss:$12 sps:$4 sm:$0xff]  }
  0x57   :  { %311 = vmatprep.subr.bf16.mxu0 %v1838_v7  ;;  %354 = vmatprep.subr.bf16.mxu1 %v1863_v19  ;;  %v1875_v35 = vld [vmem:[#allocation5 + $0xec] ss:$16 sps:$4 sm:$0xff]   ;;  %v1886_v37 = vld [vmem:[#allocation7 + $0x34] ss:$12 sps:$4 sm:$0xff]   ;;  %v1877_v38 = vld [vmem:[#allocation5 + $0xe8] ss:$16 sps:$4 sm:$0xff]  }
  0x58   :  { %v1884_v39 = vld [vmem:[#allocation7 + $0x30] ss:$12 sps:$4 sm:$0xff]   ;;  %v1905_v40 = vld [vmem:[#allocation7 + $0xc8] ss:$12 sps:$4 sm:$0xff]   ;;  %v1889_v41 = vld [vmem:[#allocation7 + $0x4c] ss:$12 sps:$4 sm:$0xff]  }
  0x59   :  { %v1887_v42 = vld [vmem:[#allocation7 + $0x48] ss:$12 sps:$4 sm:$0xff]   ;;  %v1910_v44 = vld [vmem:[#allocation7 + $0xe0] ss:$12 sps:$4 sm:$0xff]   ;;  %v1892_v45 = vld [vmem:[#allocation7 + $0x64] ss:$12 sps:$4 sm:$0xff]  }
  0x5a   :  { %312 = vmatpush1.bf16.msra.mxu0 %v1840_v8  ;;  %355 = vmatpush1.bf16.msra.mxu1 %v1865_v21  ;;  %v1906_v43 = vld [vmem:[#allocation7 + $0x8] ss:$12 sps:$4 sm:$0xff]   ;;  %v1911_v46 = vld [vmem:[#allocation7 + $0x20] ss:$12 sps:$4 sm:$0xff]   ;;  %v1915_v48 = vld [vmem:[#allocation7 + $0xf8] ss:$12 sps:$4 sm:$0xff]  }
  0x5b   :  { %313 = vmatprep.subr.bf16.mxu0 %v1841_v10  ;;  %356 = vmatprep.subr.bf16.mxu1 %v1866_v23  ;;  %v1890_v47 = vld [vmem:[#allocation7 + $0x60] ss:$12 sps:$4 sm:$0xff]   ;;  %v1895_v49 = vld [vmem:[#allocation7 + $0x7c] ss:$12 sps:$4 sm:$0xff]   ;;  %v1893_v50 = vld [vmem:[#allocation7 + $0x78] ss:$12 sps:$4 sm:$0xff]  }
  0x5c   :  { %v1898_v51 = vld [vmem:[#allocation7 + $0x94] ss:$12 sps:$4 sm:$0xff]   ;;  %v1916_v52 = vld [vmem:[#allocation7 + $0x38] ss:$12 sps:$4 sm:$0xff]   ;;  %v1920_v53 = vld [vmem:[#allocation7 + $0x110] ss:$12 sps:$4 sm:$0xff]  }
  0x5d   :  { %v1921_v54 = vld [vmem:[#allocation7 + $0x50] ss:$12 sps:$4 sm:$0xff]   ;;  %v1925_v56 = vld [vmem:[#allocation7 + $0x128] ss:$12 sps:$4 sm:$0xff]   ;;  %v1901_v57 = vld [vmem:[#allocation7 + $0xac] ss:$12 sps:$4 sm:$0xff]  }
  0x5e   :  { %314 = vmatpush1.bf16.msra.mxu0 %v1843_v14  ;;  %357 = vmatpush1.bf16.msra.mxu1 %v1868_v25  ;;  %v1896_v55 = vld [vmem:[#allocation7 + $0x90] ss:$12 sps:$4 sm:$0xff]   ;;  %v1926_v58 = vld [vmem:[#allocation7 + $0x68] ss:$12 sps:$4 sm:$0xff]   ;;  %v1930_v60 = vld [vmem:[#allocation7 + $0x140] ss:$12 sps:$4 sm:$0xff]  }
  0x5f   :  { %315 = vmatprep.subr.bf16.mxu0 %v1844_v16  ;;  %358 = vmatprep.subr.bf16.mxu1 %v1869_v27  ;;  %v1899_v59 = vld [vmem:[#allocation7 + $0xa8] ss:$12 sps:$4 sm:$0xff]   ;;  %v1904_v61 = vld [vmem:[#allocation7 + $0xc4] ss:$12 sps:$4 sm:$0xff]   ;;  %v1931_v62 = vld [vmem:[#allocation7 + $0x80] ss:$12 sps:$4 sm:$0xff]  }
  0x60   :  { %v1902_v63 = vld [vmem:[#allocation7 + $0xc0] ss:$12 sps:$4 sm:$0xff]   ;;  %v1909_v0 = vld [vmem:[#allocation7 + $0xdc] ss:$12 sps:$4 sm:$0xff]   ;;  %v1907_v1 = vld [vmem:[#allocation7 + $0xd8] ss:$12 sps:$4 sm:$0xff]  }
  0x61   :  { %v1914_v2 = vld [vmem:[#allocation7 + $0xf4] ss:$12 sps:$4 sm:$0xff]   ;;  %v1912_v3 = vld [vmem:[#allocation7 + $0xf0] ss:$12 sps:$4 sm:$0xff]   ;;  %v1919_v4 = vld [vmem:[#allocation7 + $0x10c] ss:$12 sps:$4 sm:$0xff]  }
  0x62   :  { %316 = vmatpush1.bf16.msra.mxu0 %v1846_v18  ;;  %359 = vmatpush1.bf16.msra.mxu1 %v1871_v30  ;;  %v1917_v5 = vld [vmem:[#allocation7 + $0x108] ss:$12 sps:$4 sm:$0xff]   ;;  %v1924_v6 = vld [vmem:[#allocation7 + $0x124] ss:$12 sps:$4 sm:$0xff]   ;;  %v1922_v7 = vld [vmem:[#allocation7 + $0x120] ss:$12 sps:$4 sm:$0xff]  }
  0x63   :  { %317 = vmatprep.subr.bf16.mxu0 %v1847_v20  ;;  %360 = vmatprep.subr.bf16.mxu1 %v1872_v31  ;;  %v1929_v8 = vld [vmem:[#allocation7 + $0x13c] ss:$12 sps:$4 sm:$0xff]   ;;  %v1927_v9 = vld [vmem:[#allocation7 + $0x138] ss:$12 sps:$4 sm:$0xff]   ;;  %v1934_v10 = vld [vmem:[#allocation7 + $0x154] ss:$12 sps:$4 sm:$0xff]   ;;  %v119_v20 = vlaneseq }
  0x64   :  { %v1935_v11 = vld [vmem:[#allocation7 + $0x158] ss:$12 sps:$4 sm:$0xff]   ;;  %v1932_v12 = vld [vmem:[#allocation7 + $0x150] ss:$12 sps:$4 sm:$0xff]   ;;  %v1937_v16 = vld [vmem:[#allocation7 + $0x168] ss:$12 sps:$4 sm:$0xff]  }
  0x65   :  { %v1936_v13 = vld [vmem:[#allocation7 + $0x98] ss:$12 sps:$4 sm:$0xff]   ;;  %v1940_v15 = vld [vmem:[#allocation7 + $0x170] ss:$12 sps:$4 sm:$0xff]   ;;  %v1945_v19 = vld [vmem:[#allocation7 + $0x248] ss:$12 sps:$4 sm:$0xff]  }
  0x66   :  { %318 = vmatpush1.bf16.msra.mxu0 %v1849_v22  ;;  %361 = vmatpush1.bf16.msra.mxu1 %v1874_v34  ;;  %v1939_v14 = vld [vmem:[#allocation7 + $0x16c] ss:$12 sps:$4 sm:$0xff]   ;;  %v1941_v17 = vld [vmem:[#allocation7 + $0xb0] ss:$12 sps:$4 sm:$0xff]   ;;  %v2260_v21 = vshrl.u32 %v119_v20, 7  ;;  %vm2164_vm0 = vmmov 0  }
  0x67   :  { %319 = vmatprep.subr.bf16.mxu0 %v1850_v24  ;;  %362 = vmatprep.subr.bf16.mxu1 %v1875_v35  ;;  %v1944_v18 = vld [vmem:[#allocation7 + $0x184] ss:$12 sps:$4 sm:$0xff]   ;;  %v117_v23 = vld [vmem:[%s2317_s2] sm:$0xf]  ;;  %s2165_s10 = smov [#allocation10]  }
  0x68   :  { %v121_v22 = vsub.s32 0, %v2260_v21  ;;  %v125_v24 = vsub.s32 1, %v2260_v21  ;;  %v129_v35 = vsub.s32 2, %v2260_v21  ;;  %v1976_v20 = vld [vmem:[#allocation7 + $0x218] ss:$12 sps:$4 sm:$0xff]   ;;  %s1535_s11 = sshll.u32 %s2165_s10, 4  ;;  %s1536_s11 = int_to_ptr.vmem [resolvable:$true] %s1535_s11 }
  0x69   :  { %s2122_s12 = scalar_lea.vmem %s1536_s11, 128  ;;  %p2127_p5 = scmp.lt.s32.totalorder %s1536_s11, %s1536_s11 }
  0x6a   :  { %320 = vmatpush1.bf16.msra.mxu0 %v1852_v26  ;;  %363 = vmatpush1.bf16.msra.mxu1 %v1877_v38  ;;  %v122_v25 = vrot.slane %v117_v23, %v121_v22  ;;  %v126_v26 = vrot.slane %v117_v23, %v125_v24  ;;  %v133_v38 = vsub.s32 3, %v2260_v21  ;;  %v2023_v21 = vld [vmem:[#allocation8 + $0x88] sm:$0xff]   ;;  %p2123_p4 = scmp.ne.s32.totalorder %s1536_s11, %s2122_s12  ;;  %p2128_p6 = scmp.lt.s32.totalorder %s2122_s12, %s2122_s12 }
  0x6b   :  { %1060 = vmatprep.subr.bf16.mxu0 %v1880_v28  ;;  %1712 = vmatprep.subr.bf16.mxu1 %v1905_v40 }
  0x6c   :  { %p2129_p7 = por %p2128_p6, %p2127_p5 }
  0x6d   :  { %338 = vmatmul.mubr.bf16.vlgmr.msra.gmra.mrb[0].mxu0 %v1855_v29  ;;  %381 = vmatmul.mubr.bf16.vlgmr.msra.gmra.mrb[0].mxu1 %v1855_v29 }
  0x6e   :  { %1061 = vmatpush1.bf16.msra.mxu0 %v1878_v32  ;;  %1713 = vmatpush3.bf16.msra.mxu1 %v1906_v43  ;;  %v1942_v43 = vld [vmem:[#allocation7 + $0x180] ss:$12 sps:$4 sm:$0xff]   ;;  %p2130_p8 = pnand %p2129_p7, %p2123_p4 }
  0x6f   :  { %1062 = vmatprep.subr.bf16.mxu0 %v1883_v33  ;;  %1714 = vmatprep.subr.bf16.mxu1 %v1910_v44  ;;  %v1946_v44 = vld [vmem:[#allocation7 + $0x188] ss:$12 sps:$4 sm:$0xff]  }
  0x72   :  { %1063 = vmatpush1.bf16.msra.mxu0 %v1881_v36  ;;  %1715 = vmatpush3.bf16.msra.mxu1 %v1911_v46  ;;  %v1949_v46 = vld [vmem:[#allocation7 + $0x19c] ss:$12 sps:$4 sm:$0xff]  }
  0x73   :  { %1064 = vmatprep.subr.bf16.mxu0 %v1886_v37  ;;  %1716 = vmatprep.subr.bf16.mxu1 %v1915_v48  ;;  %v134_v48 = vrot.slane %v117_v23, %v133_v38  ;;  %v1994_v38 = vld [vmem:[#allocation7 + $0x2a0] ss:$12 sps:$4 sm:$0xff]  }
  0x76   :  { %1065 = vmatpush1.bf16.msra.mxu0 %v1884_v39  ;;  %1717 = vmatpush3.bf16.msra.mxu1 %v1916_v52 }
  0x77   :  { %1066 = vmatprep.subr.bf16.mxu0 %v1889_v41  ;;  %1718 = vmatprep.subr.bf16.mxu1 %v1920_v53 }
  0x7a   :  { %1067 = vmatpush1.bf16.msra.mxu0 %v1887_v42  ;;  %1719 = vmatpush3.bf16.msra.mxu1 %v1921_v54  ;;  %v1954_v54 = vld [vmem:[#allocation7 + $0x1b4] ss:$12 sps:$4 sm:$0xff]  }
  0x7b   :  { %1068 = vmatprep.subr.bf16.mxu0 %v1892_v45  ;;  %1720 = vmatprep.subr.bf16.mxu1 %v1925_v56  ;;  %v130_v45 = vrot.slane %v117_v23, %v129_v35  ;;  %v1979_v23 = vld [vmem:[#allocation7 + $0x22c] ss:$12 sps:$4 sm:$0xff]  }
  0x7e   :  { %1069 = vmatpush1.bf16.msra.mxu0 %v1890_v47  ;;  %1721 = vmatpush3.bf16.msra.mxu1 %v1926_v58  ;;  %v1950_v47 = vld [vmem:[#allocation7 + $0x260] ss:$12 sps:$4 sm:$0xff]  }
  0x7f   :  { %1070 = vmatprep.subr.bf16.mxu0 %v1895_v49  ;;  %1722 = vmatprep.subr.bf16.mxu1 %v1930_v60 }
  0x82   :  { %1071 = vmatpush1.bf16.msra.mxu0 %v1893_v50  ;;  %1723 = vmatpush3.bf16.msra.mxu1 %v1931_v62  ;;  %v1947_v50 = vld [vmem:[#allocation7 + $0x198] ss:$12 sps:$4 sm:$0xff]  }
  0x83   :  { %1072 = vmatprep.subr.bf16.mxu0 %v1898_v51  ;;  %1724 = vmatprep.subr.bf16.mxu1 %v1935_v11  ;;  %v1951_v51 = vld [vmem:[#allocation7 + $0x1a0] ss:$12 sps:$4 sm:$0xff]  }
  0x84   :  { %v1962_v11 = vld [vmem:[#allocation7 + $0x1e0] ss:$12 sps:$4 sm:$0xff]  }
  0x86   :  { %1073 = vmatpush1.bf16.msra.mxu0 %v1896_v55  ;;  %1725 = vmatpush3.bf16.msra.mxu1 %v1936_v13  ;;  %v1955_v55 = vld [vmem:[#allocation7 + $0x278] ss:$12 sps:$4 sm:$0xff]   ;;  %v1969_v13 = vld [vmem:[#allocation7 + $0x1fc] ss:$12 sps:$4 sm:$0xff]  }
  0x87   :  { %1074 = vmatprep.subr.bf16.mxu0 %v1901_v57  ;;  %1726 = vmatprep.subr.bf16.mxu1 %v1940_v15  ;;  %v1967_v15 = vld [vmem:[#allocation7 + $0x1f8] ss:$12 sps:$4 sm:$0xff]  }
  0x8a   :  { %1075 = vmatpush1.bf16.msra.mxu0 %v1899_v59  ;;  %1727 = vmatpush3.bf16.msra.mxu1 %v1941_v17  ;;  %v1974_v17 = vld [vmem:[#allocation7 + $0x214] ss:$12 sps:$4 sm:$0xff]  }
  0x8b   :  { %1076 = vmatprep.subr.bf16.mxu0 %v1904_v61  ;;  %1734 = vmatprep.subr.bf16.mxu1 %v1945_v19  ;;  %v1972_v19 = vld [vmem:[#allocation7 + $0x210] ss:$12 sps:$4 sm:$0xff]  }
  0x8e   :  { %1077 = vmatpush1.bf16.msra.mxu0 %v1902_v63  ;;  %v1952_v63 = vld [vmem:[#allocation7 + $0x1b0] ss:$12 sps:$4 sm:$0xff]  }
  0x8f   :  { %1078 = vmatprep.subr.bf16.mxu0 %v1909_v0  ;;  %v1956_v0 = vld [vmem:[#allocation7 + $0x1b8] ss:$12 sps:$4 sm:$0xff]  }
  0x92   :  { %1079 = vmatpush1.bf16.msra.mxu0 %v1907_v1 }
  0x93   :  { %1080 = vmatprep.subr.bf16.mxu0 %v1914_v2  ;;  %v1959_v2 = vld [vmem:[#allocation7 + $0x1cc] ss:$12 sps:$4 sm:$0xff]  }
  0x96   :  { %1081 = vmatpush1.bf16.msra.mxu0 %v1912_v3  ;;  %v1960_v3 = vld [vmem:[#allocation7 + $0x290] ss:$12 sps:$4 sm:$0xff]  }
  0x97   :  { %1082 = vmatprep.subr.bf16.mxu0 %v1919_v4 }
  0x9a   :  { %1083 = vmatpush1.bf16.msra.mxu0 %v1917_v5 }
  0x9b   :  { %1084 = vmatprep.subr.bf16.mxu0 %v1924_v6 }
  0x9e   :  { %1085 = vmatpush1.bf16.msra.mxu0 %v1922_v7  ;;  %v1957_v7 = vld [vmem:[#allocation7 + $0x1c8] ss:$12 sps:$4 sm:$0xff]  }
  0x9f   :  { %1086 = vmatprep.subr.bf16.mxu0 %v1929_v8  ;;  %v1961_v8 = vld [vmem:[#allocation7 + $0x1d0] ss:$12 sps:$4 sm:$0xff]  }
  0xa2   :  { %1087 = vmatpush1.bf16.msra.mxu0 %v1927_v9  ;;  %v1964_v9 = vld [vmem:[#allocation7 + $0x1e4] ss:$12 sps:$4 sm:$0xff]  }
  0xa3   :  { %1088 = vmatprep.subr.bf16.mxu0 %v1934_v10  ;;  %v1965_v10 = vld [vmem:[#allocation7 + $0x2a8] ss:$12 sps:$4 sm:$0xff]  }
  0xa6   :  { %1089 = vmatpush1.bf16.msra.mxu0 %v1932_v12  ;;  %v1966_v12 = vld [vmem:[#allocation7 + $0x1e8] ss:$12 sps:$4 sm:$0xff]  }
  0xa7   :  { %1090 = vmatprep.subr.bf16.mxu0 %v1939_v14  ;;  %v1970_v14 = vld [vmem:[#allocation7 + $0x2c0] ss:$12 sps:$4 sm:$0xff]  }
  0xaa   :  { %1091 = vmatpush1.bf16.msra.mxu0 %v1937_v16  ;;  %v1971_v16 = vld [vmem:[#allocation7 + $0x200] ss:$12 sps:$4 sm:$0xff]  }
  0xab   :  { %1103 = vmatprep.subr.bf16.mxu0 %v1944_v18  ;;  %v1975_v18 = vld [vmem:[#allocation7 + $0x2d8] ss:$12 sps:$4 sm:$0xff]  }
 0x140   :  { %v339_v27 = vpop.f32.mrb[0].mxu0  ;;  %v382_v49 = vpop.f32.mrb[0].mxu1 }
 0x141   :  { %v340_v28 = vadd.f32 %v339_v27, %v122_v25  ;;  %v341_v29 = vpop.f32.mrb[1].mxu0  ;;  %v383_v52 = vadd.f32 %v382_v49, %v130_v45  ;;  %v384_v53 = vpop.f32.mrb[1].mxu1  ;;  %v1981_v27 = vld [vmem:[#allocation7 + $0x230] ss:$12 sps:$4 sm:$0xff]  }
 0x142   :  { %v342_v30 = vadd.f32 %v341_v29, %v126_v26  ;;  %v343_v31 = vpop.f32.mrb[2].mxu0  ;;  %v385_v56 = vadd.f32 %v384_v53, %v134_v48  ;;  %v386_v57 = vpop.f32.mrb[2].mxu1  ;;  %v1982_v29 = vld [vmem:[#allocation7 + $0x240] ss:$12 sps:$4 sm:$0xff]   ;;  %v2010_v49 = vld [vmem:[#allocation8 + $0x50] sm:$0xff]  }
 0x143   :  { %v344_v32 = vadd.f32 %v343_v31, %v122_v25  ;;  %v345_v33 = vpop.f32.mrb[3].mxu0  ;;  %v391_v36 = vmax.f32 %v340_v28, 0.0  ;;  %v393_v58 = vmax.f32 %v383_v52, 0.0  ;;  %v387_v59 = vadd.f32 %v386_v57, %v130_v45  ;;  %v388_v60 = vpop.f32.mrb[3].mxu1  ;;  %v1980_v25 = vld [vmem:[#allocation7 + $0x2f0] ss:$12 sps:$4 sm:$0xff]  }
 0x144   :  { %v346_v34 = vadd.f32 %v345_v33, %v126_v26  ;;  %v392_v39 = vmax.f32 %v342_v30, 0.0  ;;  %v394_v61 = vmax.f32 %v385_v56, 0.0  ;;  %v389_v62 = vadd.f32 %v388_v60, %v134_v48  ;;  %v1977_v26 = vld [vmem:[#allocation7 + $0x228] ss:$12 sps:$4 sm:$0xff]   ;;  %v1984_v28 = vld [vmem:[#allocation7 + $0x244] ss:$12 sps:$4 sm:$0xff]  }
 0x145   :  { %v395_v37 = vmax.f32 %v344_v32, 0.0  ;;  %v397_v1 = vmax.f32 %v387_v59, 0.0  ;;  %v1987_v30 = vld [vmem:[#allocation7 + $0x25c] ss:$12 sps:$4 sm:$0xff]   ;;  %v1985_v31 = vld [vmem:[#allocation7 + $0x258] ss:$12 sps:$4 sm:$0xff]  }
 0x146   :  { %v396_v40 = vmax.f32 %v346_v34, 0.0  ;;  %v398_v4 = vmax.f32 %v389_v62, 0.0  ;;  %v1990_v32 = vld [vmem:[#allocation7 + $0x274] ss:$12 sps:$4 sm:$0xff]   ;;  %v1988_v33 = vld [vmem:[#allocation7 + $0x270] ss:$12 sps:$4 sm:$0xff]  }
 0x147   :  { %v399_v41 = vpack.c.bf16 %v395_v37, %v391_v36  ;;  %v2275_v5 = vpack.c.bf16 %v397_v1, %v393_v58  ;;  %v1993_v34 = vld [vmem:[#allocation7 + $0x28c] ss:$12 sps:$4 sm:$0xff]   ;;  %v1991_v36 = vld [vmem:[#allocation7 + $0x288] ss:$12 sps:$4 sm:$0xff]   ;;  %v1996_v37 = vld [vmem:[#allocation7 + $0x2a4] ss:$12 sps:$4 sm:$0xff]  }
 0x148   :  { %v400_v42 = vpack.c.bf16 %v396_v40, %v392_v39  ;;  %v402_v6 = vpack.c.bf16 %v398_v4, %v394_v61  ;;  %v1999_v39 = vld [vmem:[#allocation7 + $0x2bc] ss:$12 sps:$4 sm:$0xff]   ;;  %v1997_v40 = vld [vmem:[#allocation7 + $0x2b8] ss:$12 sps:$4 sm:$0xff]   ;;  %v2018_v57 = vld [vmem:[#allocation8 + $0x70] sm:$0xff]   ;;  %v2163_v61 = vmov 0.0  }
 0x149   :  { %v2006_v45 = vld [vmem:[#allocation8 + $0x40] sm:$0xff]   ;;  %v2009_v48 = vld [vmem:[#allocation8 + $0x8] sm:$0xff]   ;;  %v2013_v52 = vld [vmem:[#allocation8 + $0x18] sm:$0xff]  }
 0x14a   :  { %1092 = vmatprep.mubr.bf16.mxu0 %v400_v42  ;;  %1178 = vmatprep.mubr.bf16.mxu1 %v400_v42  ;;  %v2000_v42 = vld [vmem:[#allocation7 + $0x2d0] ss:$12 sps:$4 sm:$0xff]   ;;  %v2014_v53 = vld [vmem:[#allocation8 + $0x60] sm:$0xff]   ;;  %v2017_v56 = vld [vmem:[#allocation8 + $0x28] sm:$0xff]  }
 0x14b   :  { %1093 = vmatmul.mubr.bf16.vlgmr.msra.gmra.mrb[4].mxu0 %v399_v41  ;;  %1179 = vmatmul.mubr.bf16.vlgmr.msra.gmra.mrb[4].mxu1 %v399_v41  ;;  %v2002_v41 = vld [vmem:[#allocation7 + $0x2d4] ss:$12 sps:$4 sm:$0xff]   ;;  %v2020_v59 = vld [vmem:[#allocation8 + $0x78] sm:$0xff]  }
 0x14c   :  { %1104 = vmatpush1.bf16.msra.mxu0 %v1942_v43  ;;  %1735 = vmatpush3.bf16.msra.mxu1 %v1946_v44  ;;  %v2005_v43 = vld [vmem:[#allocation7 + $0x2ec] ss:$12 sps:$4 sm:$0xff]   ;;  %v2003_v44 = vld [vmem:[#allocation7 + $0x2e8] ss:$12 sps:$4 sm:$0xff]  }
 0x14d   :  { %1105 = vmatprep.subr.bf16.mxu0 %v1949_v46  ;;  %1736 = vmatprep.subr.bf16.mxu1 %v1950_v47  ;;  %v2007_v46 = vld [vmem:[#allocation8] sm:$0xff]   ;;  %v2008_v47 = vld [vmem:[#allocation8 + $0x48] sm:$0xff]   ;;  %v2019_v58 = vld [vmem:[#allocation8 + $0x30] sm:$0xff]  }
 0x14e   :  { %1219 = vmatprep.mubr.bf16.mxu1 %v402_v6  ;;  %1135 = vmatprep.mubr.bf16.mxu0 %v402_v6  ;;  %v2021_v60 = vld [vmem:[#allocation8 + $0x38] sm:$0xff]  }
 0x14f   :  { %v531_v4 = vld [vmem:[%s2319_s4] sm:$0x7] }
 0x150   :  { %1106 = vmatpush1.bf16.msra.mxu0 %v1947_v50  ;;  %1737 = vmatpush3.bf16.msra.mxu1 %v1951_v51  ;;  %v2011_v50 = vld [vmem:[#allocation8 + $0x10] sm:$0xff]   ;;  %v2012_v51 = vld [vmem:[#allocation8 + $0x58] sm:$0xff]  }
 0x151   :  { %1107 = vmatprep.subr.bf16.mxu0 %v1954_v54  ;;  %1738 = vmatprep.subr.bf16.mxu1 %v1955_v55  ;;  %v2015_v54 = vld [vmem:[#allocation8 + $0x20] sm:$0xff]   ;;  %v2016_v55 = vld [vmem:[#allocation8 + $0x68] sm:$0xff]  }
 0x154   :  { %1108 = vmatpush1.bf16.msra.mxu0 %v1952_v63  ;;  %1739 = vmatpush3.bf16.msra.mxu1 %v1956_v0 }
 0x155   :  { %1109 = vmatprep.subr.bf16.mxu0 %v1959_v2  ;;  %1740 = vmatprep.subr.bf16.mxu1 %v1960_v3 }
 0x158   :  { %1110 = vmatpush1.bf16.msra.mxu0 %v1957_v7  ;;  %1741 = vmatpush3.bf16.msra.mxu1 %v1961_v8 }
 0x159   :  { %1111 = vmatprep.subr.bf16.mxu0 %v1964_v9  ;;  %1742 = vmatprep.subr.bf16.mxu1 %v1965_v10 }
 0x15c   :  { %1112 = vmatpush1.bf16.msra.mxu0 %v1962_v11  ;;  %1743 = vmatpush3.bf16.msra.mxu1 %v1966_v12 }
 0x15d   :  { %1113 = vmatprep.subr.bf16.mxu0 %v1969_v13  ;;  %1744 = vmatprep.subr.bf16.mxu1 %v1970_v14 }
 0x160   :  { %1114 = vmatpush1.bf16.msra.mxu0 %v1967_v15  ;;  %1745 = vmatpush3.bf16.msra.mxu1 %v1971_v16 }
 0x161   :  { %1115 = vmatprep.subr.bf16.mxu0 %v1974_v17  ;;  %1746 = vmatprep.subr.bf16.mxu1 %v1975_v18 }
 0x164   :  { %1116 = vmatpush1.bf16.msra.mxu0 %v1972_v19  ;;  %1747 = vmatpush3.bf16.msra.mxu1 %v1976_v20  ;;  %v536_v19 = vrot.slane %v531_v4, %v121_v22  ;;  %v540_v20 = vrot.slane %v531_v4, %v125_v24  ;;  %v2024_v22 = vld [vmem:[#allocation8 + $0x90] sm:$0xff]   ;;  %v2025_v24 = vld [vmem:[#allocation8 + $0x98] sm:$0xff]  }
 0x165   :  { %1117 = vmatprep.subr.bf16.mxu0 %v1979_v23  ;;  %1748 = vmatprep.subr.bf16.mxu1 %v1980_v25 }
 0x168   :  { %1118 = vmatpush1.bf16.msra.mxu0 %v1977_v26  ;;  %1749 = vmatpush3.bf16.msra.mxu1 %v1981_v27 }
 0x169   :  { %1119 = vmatprep.subr.bf16.mxu0 %v1984_v28  ;;  %1756 = vmatprep.subr.bf16.mxu1 %v2006_v45 }
 0x16b   :  { %1220 = vmatmul.mubr.bf16.vlgmr.msra.gmra.mrb[8].mxu1 %v2275_v5 }
 0x16c   :  { %1120 = vmatpush1.bf16.msra.mxu0 %v1982_v29  ;;  %1757 = vmatpush3.bf16.msra.mxu1 %v2007_v46 }
 0x16d   :  { %1121 = vmatprep.subr.bf16.mxu0 %v1987_v30  ;;  %1758 = vmatprep.subr.bf16.mxu1 %v2008_v47 }
 0x170   :  { %1122 = vmatpush1.bf16.msra.mxu0 %v1985_v31  ;;  %1759 = vmatpush3.bf16.msra.mxu1 %v2009_v48 }
 0x171   :  { %1123 = vmatprep.subr.bf16.mxu0 %v1990_v32  ;;  %1760 = vmatprep.subr.bf16.mxu1 %v2010_v49  ;;  %v1678_v49 = vld [vmem:[%s2321_s6] ss:$0 sm:$0xff] }
 0x174   :  { %1124 = vmatpush1.bf16.msra.mxu0 %v1988_v33  ;;  %1761 = vmatpush3.bf16.msra.mxu1 %v2011_v50 }
 0x175   :  { %1125 = vmatprep.subr.bf16.mxu0 %v1993_v34  ;;  %1762 = vmatprep.subr.bf16.mxu1 %v2012_v51 }
 0x178   :  { %1126 = vmatpush1.bf16.msra.mxu0 %v1991_v36  ;;  %1763 = vmatpush3.bf16.msra.mxu1 %v2013_v52 }
 0x179   :  { %1127 = vmatprep.subr.bf16.mxu0 %v1996_v37  ;;  %1764 = vmatprep.subr.bf16.mxu1 %v2014_v53 }
 0x17c   :  { %1128 = vmatpush1.bf16.msra.mxu0 %v1994_v38  ;;  %1765 = vmatpush3.bf16.msra.mxu1 %v2015_v54  ;;  %v2022_v38 = vld [vmem:[#allocation8 + $0x80] sm:$0xff]  }
 0x17d   :  { %1129 = vmatprep.subr.bf16.mxu0 %v1999_v39  ;;  %1766 = vmatprep.subr.bf16.mxu1 %v2016_v55  ;;  %v2026_v39 = vld [vmem:[#allocation8 + $0xa0] sm:$0xff]  }
 0x180   :  { %1130 = vmatpush1.bf16.msra.mxu0 %v1997_v40  ;;  %1767 = vmatpush3.bf16.msra.mxu1 %v2017_v56  ;;  %v2027_v40 = vld [vmem:[#allocation8 + $0xa8] sm:$0xff]  }
 0x181   :  { %1131 = vmatprep.subr.bf16.mxu0 %v2002_v41  ;;  %1768 = vmatprep.subr.bf16.mxu1 %v2018_v57  ;;  %v2028_v41 = vld [vmem:[#allocation8 + $0xb0] sm:$0xff]  }
 0x184   :  { %1132 = vmatpush1.bf16.msra.mxu0 %v2000_v42  ;;  %1769 = vmatpush3.bf16.msra.mxu1 %v2019_v58  ;;  %v2029_v42 = vld [vmem:[#allocation8 + $0xb8] sm:$0xff]  }
 0x185   :  { %1133 = vmatprep.subr.bf16.mxu0 %v2005_v43  ;;  %1770 = vmatprep.subr.bf16.mxu1 %v2020_v59 }
 0x188   :  { %1134 = vmatpush1.bf16.msra.mxu0 %v2003_v44  ;;  %1771 = vmatpush3.bf16.msra.mxu1 %v2021_v60 }
 0x189   :  { %1787 = vmatprep.subr.bf16.mxu1 %v2163_v61 }
 0x18b   :  { %1136 = vmatmul.mubr.bf16.vlgmr.msra.gmra.mrb[4].mxu0 %v2275_v5  ;;  %v544_v5 = vrot.slane %v531_v4, %v129_v35 }
 0x21e   :  { %v1728_v62 = vpop.f32.mrb[4].mxu1 }
 0x21f   :  { %v1729_v63 = vpop.f32.mrb[5].mxu1 }
 0x220   :  { %v1730_v0 = vadd.f32 %v1729_v63, %v1728_v62  ;;  %v1731_v1 = vpop.f32.mrb[6].mxu1 }
 0x221   :  { %v1732_v2 = vpop.f32.mrb[7].mxu1 }
 0x222   :  { %v1733_v3 = vadd.f32 %v1732_v2, %v1731_v1  ;;  %v1181_v8 = vadd.f32 %v1730_v0, %v544_v5 }
 0x224   :  { %v1184_v12 = vadd.f32 %v1733_v3, %v544_v5 }
 0x23e   :  { %v1750_v6 = vpop.f32.mrb[8].mxu1 }
 0x23f   :  { %v1751_v7 = vpop.f32.mrb[9].mxu1 }
 0x240   :  { %v1752_v9 = vadd.f32 %v1751_v7, %v1750_v6  ;;  %v1753_v10 = vpop.f32.mrb[10].mxu1 }
 0x241   :  { %v1754_v11 = vpop.f32.mrb[11].mxu1 }
 0x242   :  { %v1222_v13 = vadd.f32 %v1752_v9, %v1181_v8  ;;  %v1755_v14 = vadd.f32 %v1754_v11, %v1753_v10 }
 0x244   :  { %v1225_v15 = vadd.f32 %v1755_v14, %v1184_v12  ;;  %v1230_v16 = vmax.f32 %v1222_v13, 0.0 }
 0x246   :  { %v1233_v17 = vmax.f32 %v1225_v15, 0.0 }
 0x248   :  { %v1236_v18 = vpack.c.bf16 %v1233_v17, %v1230_v16 }
 0x25e   :  { %v1137_v35 = vpop.f32.mrb[4].mxu0 }
 0x25f   :  { %v1807_v23 = vadd.f32 %v1137_v35, %v536_v19  ;;  %v1139_v25 = vpop.f32.mrb[5].mxu0 }
 0x260   :  { %v1808_v26 = vadd.f32 %v1139_v25, %v540_v20  ;;  %v1141_v27 = vpop.f32.mrb[6].mxu0 }
 0x261   :  { %v1809_v28 = vadd.f32 %v1141_v27, %v536_v19  ;;  %v1143_v29 = vpop.f32.mrb[7].mxu0  ;;  %v1228_v31 = vmax.f32 %v1807_v23, 0.0 }
 0x262   :  { %v1810_v30 = vadd.f32 %v1143_v29, %v540_v20  ;;  %v1229_v33 = vmax.f32 %v1808_v26, 0.0 }
 0x263   :  { %v1231_v32 = vmax.f32 %v1809_v28, 0.0 }
 0x264   :  { %v1232_v34 = vmax.f32 %v1810_v30, 0.0 }
 0x265   :  { %v1234_v36 = vpack.c.bf16 %v1231_v32, %v1228_v31 }
 0x266   :  { %v1235_v37 = vpack.c.bf16 %v1232_v34, %v1229_v33 }
 0x268   :  { %1468 = vmatprep.mubr.bf16.mxu1 %v1235_v37 }
 0x269   :  { %1469 = vmatmul.mubr.bf16.vlgmr.msra.gmra.mrb[12].mxu1 %v1234_v36 }
 0x26a   :  { %1788 = vmatpush3.bf16.msra.mxu1 %v2022_v38  ;;  %1803 = vmatprep.mubr.msk.bf16.mxu1 %vm2164_vm0, %v2163_v61 }
 0x26b   :  { %1789 = vmatprep.subr.bf16.mxu1 %v2163_v61 }
 0x26e   :  { %1790 = vmatpush3.bf16.msra.mxu1 %v2023_v21 }
 0x26f   :  { %1791 = vmatprep.subr.bf16.mxu1 %v2163_v61 }
 0x272   :  { %1792 = vmatpush3.bf16.msra.mxu1 %v2024_v22 }
 0x273   :  { %1793 = vmatprep.subr.bf16.mxu1 %v2163_v61 }
 0x276   :  { %1794 = vmatpush3.bf16.msra.mxu1 %v2025_v24 }
 0x277   :  { %1795 = vmatprep.subr.bf16.mxu1 %v2163_v61 }
 0x27a   :  { %1796 = vmatpush3.bf16.msra.mxu1 %v2026_v39 }
 0x27b   :  { %1797 = vmatprep.subr.bf16.mxu1 %v2163_v61 }
 0x27e   :  { %1798 = vmatpush3.bf16.msra.mxu1 %v2027_v40 }
 0x27f   :  { %1799 = vmatprep.subr.bf16.mxu1 %v2163_v61 }
 0x282   :  { %1800 = vmatpush3.bf16.msra.mxu1 %v2028_v41 }
 0x283   :  { %1801 = vmatprep.subr.bf16.mxu1 %v2163_v61 }
 0x286   :  { %1802 = vmatpush3.bf16.msra.mxu1 %v2029_v42 }
 0x289   :  { %1804 = vmatmul.mubr.bf16.vlgmr.msra.gmra.mrb[16].mxu1 %v1236_v18 }
 0x33c   :  { %v1772_v43 = vpop.f32.mrb[12].mxu1 }
 0x33d   :  { %v1773_v44 = vpop.f32.mrb[13].mxu1 }
 0x33e   :  { %v1774_v45 = vadd.f32 %v1773_v44, %v1772_v43  ;;  %v1775_v46 = vpop.f32.mrb[14].mxu1 }
 0x33f   :  { %v1776_v47 = vpop.f32.mrb[15].mxu1 }
 0x340   :  { %v1777_v48 = vadd.f32 %v1776_v47, %v1775_v46  ;;  %v1471_v50 = vadd.f32 %v1774_v45, %v1678_v49 }
 0x342   :  { %v1474_v54 = vadd.f32 %v1777_v48, %v1678_v49 }
 0x35c   :  { %v1511_v51 = vpop.f32.mrb[16].mxu1 }
 0x35d   :  { %v1512_v52 = vadd.f32 %v1511_v51, %v1471_v50  ;;  %v1805_v53 = vpop.f32.mrb[17].mxu1 }
 0x35e   :  { %v1514_v55 = vpop.f32.mrb[18].mxu1 }
 0x35f   :  { %v1515_v56 = vadd.f32 %v1514_v55, %v1474_v54  ;;  %v1806_v57 = vpop.f32.mrb[19].mxu1  ;;  %2030 = vtanh.f32 %v1512_v52 }
 0x361   :  { %2032 = vtanh.f32 %v1515_v56 }
 0x369   :  { %v2031_v58 = vpop.eup %2030 }
 0x36b   :  { %v2033_v59 = vpop.eup %2032 }
 0x36c   :  { %v1710_v60 = vpack.c.bf16 %v2033_v59, %v2031_v58 }
 0x36e   :  { %1711 = vst [vmem:[#allocation10] sm:$0xff] %v1710_v60  }
 0x36f   :  { %2133 = shalt.err (!%p2130_p8)
}
 0x370   :  { %s2134_s14 = scalar_lea.hbm %s2322_s7, 128 }
 0x371   :  { %p2135_p9 = scmp.ne.s32.totalorder %s2322_s7, %s2134_s14  ;;  %p2138_p10 = scmp.lt.u32.totalorder %s2134_s14, %s2322_s7 }
 0x373   :  { %p2140_p11 = pnand %p2138_p10, %p2135_p9 }
 0x375   :  { %2143 = shalt.err (!%p2140_p11)
}
 0x376   :  { %1541 = dma.vmem_to_hbm [thread:$0]  %s1536_s11, 128, %s2322_s7, [#allocation4], %s2156_s1, %s2156_s1, %s2157_s25  }
 0x377   :  { %2150 = dma.done.wait [#allocation4], 128  }
 0x378   :  { %2151 = vsyncadd [#allocation4], 4294967168 }
 0x379   :  { %1545 = vsyncpa [#allocation3], 1 }
 0x37a   :  { %1546 = vsyncpa [#allocation6], 1 }
 0x37b   :  { %1547 = vsyncpa [#allocation9], 1 }
 0x37c   :  { %1548 = vsyncpa [#allocation4], 1 }

</bundles_post_ra>
